<compile_context>
chip_gen: v7x
topology: tpu7x:2x2x1
jax: 0.10.0
libtpu: 0.0.40
codegen_flags: <defaults>
</compile_context>

<pallas_src>
import functools

import jax
import jax.numpy as jnp
from jax.experimental import pallas as pl
from jax.experimental.pallas import tpu as pltpu


def _dual_attention_kernel(gamma_ref, x_ref, mt_ref, r_ref, wv_ref, bv_ref,
                           out_ref, *, bblk):
    # x_ref block: (Bblk, C, N) f32 in conv layout -> lane dim is N (lane-dense
    # loads/stores); out_ref block identical.
    gamma = gamma_ref[0, 0]
    mt = mt_ref[...]                 # (C, C) bf16  = Wk^T Wq
    wv = wv_ref[...]                 # (C, C) bf16
    r = r_ref[...]                   # (C, 1) f32   = Wk^T bq
    bv = bv_ref[...]                 # (C, 1) f32

    def body(b, carry):
        x_b = x_ref[b]                                   # (C, N) f32
        x16 = x_b.astype(jnp.bfloat16)

        # Folded Q/K projection (bias folded): u_i = Wk^T (Wq x_i + bq).
        u = jnp.dot(mt, x16, preferred_element_type=jnp.float32) + r       # (C, N) f32
        u16 = u.astype(jnp.bfloat16)
        # Value projection WITHOUT bv (bv re-added exactly in the epilogue
        # because each softmax row sums to ~1).
        v16 = jnp.dot(wv, x16,
                      preferred_element_type=jnp.float32).astype(jnp.bfloat16)  # (C, N)

        # ---- point (spatial) attention branch ---------------------------
        # eT[j, i] = x_j . u_i  (energy already transposed -> the value matmul
        # below is a plain NN matmul, no (N,N) transpose).
        e_t = jax.lax.dot_general(x16, u16, (((0,), (0,)), ((), ())),
                                  preferred_element_type=jnp.float32)      # (N, N) ~ (j, i)
        # Softmax over j = axis 0; exp overwrites the shifted logits so only
        # one (N, N) f32 temp is live.
        e_t = e_t - jnp.max(e_t, axis=0, keepdims=True)
        ep = jnp.exp(e_t)                                                   # (N, N)
        inv_l = pl.reciprocal(jnp.sum(ep, axis=0, keepdims=True),
                              approx=True)                                  # (1, N)
        # Unnormalized value matmul; fold the 1/l scale into the small result.
        pa_p = jnp.dot(v16, ep.astype(jnp.bfloat16),
                       preferred_element_type=jnp.float32) * inv_l          # (C, N)

        # ---- channel attention branch -----------------------------------
        # Logits are O(N); keep this tiny (C x C) matmul in f32 so the softmax
        # logit gaps are not washed out by bf16 rounding.
        e_c = jax.lax.dot_general(x_b, x_b, (((1,), (1,)), ((), ())),
                                  preferred_element_type=jnp.float32)       # (C, C)
        e_c = jnp.max(e_c, axis=-1, keepdims=True) - e_c
        e_c = e_c - jnp.max(e_c, axis=-1, keepdims=True)
        ec = jnp.exp(e_c)
        attn_c = ec * pl.reciprocal(jnp.sum(ec, axis=-1, keepdims=True),
                                    approx=True)                            # (C, C)
        pa_c = jnp.dot(attn_c, x_b, preferred_element_type=jnp.float32)     # (C, N) f32

        # ---- fused epilogue: gamma*(pa_p + pa_c + bv) + 2*x ---------------
        out_ref[b] = (gamma * (pa_p + pa_c + bv) + 2.0 * x_b).astype(out_ref.dtype)
        return carry

    jax.lax.fori_loop(0, bblk, body, 0)


def _pick_block_batches(batch, per_batch_bytes, target_bytes=512 * 1024):
    """Largest divisor of `batch` whose block moves <= ~512 KiB; prefer >= 2
    grid steps so v7x's two TensorCores both get work."""
    cap = max(1, target_bytes // max(per_batch_bytes, 1))
    divisors = [d for d in range(1, batch + 1) if batch % d == 0]
    candidates = [d for d in divisors if d <= cap] or [1]
    bblk = max(candidates)
    if bblk == batch and batch > 1:
        smaller = [d for d in candidates if d < batch]
        if smaller:
            bblk = max(smaller)
    return bblk


def dual_attention(points, gamma, wq, bq, wk, bk, wv, bv, *, block_batches=None):
    """points: (B, N, C) f32.  Weights in PyTorch Conv1d layout (C_out, C_in)."""
    B, N, C = points.shape

    # Layout plumbing: the kernel works in conv layout (B, C, N) so lanes carry N.
    # TODO(synk): in a real model keep activations in (B, C, N) end-to-end
    # (neighbouring Conv1d ops already use it) and delete these two full-HBM
    # transpose passes; they roughly double HBM traffic for this memory-bound op.
    points_t = jnp.transpose(points, (0, 2, 1))                  # (B, C, N)

    if block_batches is None:
        block_batches = _pick_block_batches(B, C * N * 4)
    assert B % block_batches == 0
    nb = B // block_batches

    # Fold Q/K projections: under the row softmax over j,
    #   softmax_j(q_i . k_j) = softmax_j(x_j . (MT x_i + r)),
    # with MT = Wk^T Wq and r = Wk^T bq (query-side bias terms drop out exactly).
    mt = jnp.dot(wk.T, wq).astype(jnp.bfloat16)                  # (C, C)
    r = jnp.dot(wk.T, bq).reshape(C, 1)                          # (C, 1) f32
    wv_b = wv.astype(jnp.bfloat16)                               # (C, C)
    bv_col = bv.reshape(C, 1)                                    # (C, 1) f32
    gamma2 = jnp.asarray(gamma, jnp.float32).reshape(1, 1)

    kernel = functools.partial(_dual_attention_kernel, bblk=block_batches)

    grid_spec = pltpu.PrefetchScalarGridSpec(
        num_scalar_prefetch=0,
        grid=(nb,),
        in_specs=[
            pl.BlockSpec((1, 1), lambda i: (0, 0), memory_space=pltpu.SMEM),   # gamma
            pl.BlockSpec((block_batches, C, N), lambda i: (i, 0, 0)),          # x slab
            pl.BlockSpec((C, C), lambda i: (0, 0)),                            # MT (bf16)
            pl.BlockSpec((C, 1), lambda i: (0, 0)),                            # r
            pl.BlockSpec((C, C), lambda i: (0, 0)),                            # Wv (bf16)
            pl.BlockSpec((C, 1), lambda i: (0, 0)),                            # bv
        ],
        out_specs=pl.BlockSpec((block_batches, C, N), lambda i: (i, 0, 0)),
    )

    out_t = pl.pallas_call(
        kernel,
        out_shape=jax.ShapeDtypeStruct((B, C, N), jnp.float32),
        grid_spec=grid_spec,
        compiler_params=pltpu.CompilerParams(
            dimension_semantics=("parallel",),
            vmem_limit_bytes=32 * 1024 * 1024,
        ),
    )(gamma2, points_t, mt, r, wv_b, bv_col)

    return jnp.transpose(out_t, (0, 2, 1))                       # back to (B, N, C)


def dual_attention_ref(points, gamma, wq, bq, wk, bk, wv, bv):
    """Pure-JAX mirror of the PyTorch forward (accurate f32 baseline)."""
    hp = jax.lax.Precision.HIGHEST

    def conv1d(x_cn, w, b):            # x_cn: (B, C_in, N), w: (C_out, C_in)
        return jnp.einsum('oc,bcn->bon', w, x_cn, precision=hp) + b[None, :, None]

    points_p = jnp.transpose(points, (0, 2, 1))                            # (B, C, N)
    proj_query_p = jnp.transpose(conv1d(points_p, wq, bq), (0, 2, 1))      # (B, N, C8)
    proj_key_p = conv1d(points_p, wk, bk)                                  # (B, C8, N)
    energy_p = jnp.einsum('bnc,bcm->bnm', proj_query_p, proj_key_p, precision=hp)
    attn_p = jax.nn.softmax(energy_p, axis=-1)
    proj_value_p = conv1d(points_p, wv, bv)                                # (B, C, N)
    pa_p = jnp.einsum('bcm,bnm->bcn', proj_value_p, attn_p, precision=hp)
    pa_p = gamma * pa_p + points_p

    points_c = points_p                                                    # (B, C, N)
    energy_c = jnp.einsum('bcn,bdn->bcd', points_c, points_c, precision=hp)
    energy_new_c = jnp.max(energy_c, axis=-1, keepdims=True) - energy_c
    attn_c = jax.nn.softmax(energy_new_c, axis=-1)
    pa_c = jnp.einsum('bcd,bdn->bcn', attn_c, points_c, precision=hp)
    pa_c = gamma * pa_c + points_c

    out = pa_p + pa_c
    return jnp.transpose(out, (0, 2, 1))                                   # (B, N, C)


if __name__ == "__main__":
    # Larger batch so the batch-blocked grid is actually exercised
    # (Bblk = 32 -> 512 KiB blocks, grid = (2,): both v7x TensorCores busy).
    B, N, C = 64, 128, 32
    C8 = C // 8

    key = jax.random.PRNGKey(0)
    kx, kq, kbq, kk, kbk, kv, kbv = jax.random.split(key, 7)

    points = jax.random.normal(kx, (B, N, C), dtype=jnp.float32)

    # Deterministic parameter init (PyTorch Conv1d layout: (C_out, C_in)).
    # gamma is nn.Parameter(zeros(1)) in the module; use a nonzero value here
    # so the attention paths are actually exercised.
    gamma = jnp.float32(0.5)
    wq = 0.1 * jax.random.normal(kq, (C8, C), dtype=jnp.float32)
    bq = 0.1 * jax.random.normal(kbq, (C8,), dtype=jnp.float32)
    wk = 0.1 * jax.random.normal(kk, (C8, C), dtype=jnp.float32)
    bk = 0.1 * jax.random.normal(kbk, (C8,), dtype=jnp.float32)
    wv = 0.1 * jax.random.normal(kv, (C, C), dtype=jnp.float32)
    bv = 0.1 * jax.random.normal(kbv, (C,), dtype=jnp.float32)
    # TODO(synk): self.normal_conv is defined in __init__ but never used in
    # forward(), so it is intentionally omitted.

    out = dual_attention(points, gamma, wq, bq, wk, bk, wv, bv)
    out = jax.block_until_ready(out)

    ref = dual_attention_ref(points, gamma, wq, bq, wk, bk, wv, bv)
    ref = jax.block_until_ready(ref)

    assert out.shape == (B, N, C)
    # bf16 MXU operands + approx-reciprocal softmax denominators drift at the
    # ~1e-3..1e-2 level vs the f32 reference, so compare at 2e-2.
    err = float(jnp.max(jnp.abs(out - ref)))
    assert jnp.allclose(out, ref, rtol=2e-2, atol=2e-2), f"max abs err {err}"

    print("KERNEL_OK")
</pallas_src>

<mosaic_0001>
module attributes {stable_mosaic.version = 11 : i64} {
  func.func @_dual_attention_kernel(%arg0: i32, %arg1: memref<1x1xf32, #tpu.memory_space<smem>>, %arg2: memref<32x32x128xf32, #tpu.memory_space<vmem>>, %arg3: memref<32x32xbf16, #tpu.memory_space<vmem>>, %arg4: memref<32x1xf32, #tpu.memory_space<vmem>>, %arg5: memref<32x32xbf16, #tpu.memory_space<vmem>>, %arg6: memref<32x1xf32, #tpu.memory_space<vmem>>, %arg7: memref<32x32x128xf32, #tpu.memory_space<vmem>>) attributes {dimension_semantics = [#tpu.dimension_semantics<parallel>], iteration_bounds = array<i64: 2>, scalar_prefetch = 0 : i64, scratch_operands = 0 : i64, tpu.core_type = #tpu.core_type<tc>, window_params = [{transform_indices = @transform_0, window_bounds = array<i64: 1, 1>}, {transform_indices = @transform_1, window_bounds = array<i64: 32, 32, 128>}, {pipeline_mode = #tpu.pipeline_mode<synchronous>, transform_indices = @transform_2, window_bounds = array<i64: 32, 32>}, {pipeline_mode = #tpu.pipeline_mode<synchronous>, transform_indices = @transform_3, window_bounds = array<i64: 32, 1>}, {pipeline_mode = #tpu.pipeline_mode<synchronous>, transform_indices = @transform_4, window_bounds = array<i64: 32, 32>}, {pipeline_mode = #tpu.pipeline_mode<synchronous>, transform_indices = @transform_5, window_bounds = array<i64: 32, 1>}, {transform_indices = @transform_6, window_bounds = array<i64: 32, 32, 128>}]} {
    %c0 = arith.constant 0 : index
    %c0_0 = arith.constant 0 : index
    %0 = memref.load %arg1[%c0, %c0_0] : memref<1x1xf32, #tpu.memory_space<smem>>
    %c0_1 = arith.constant 0 : index
    %c0_2 = arith.constant 0 : index
    %1 = vector.load %arg3[%c0_1, %c0_2] : memref<32x32xbf16, #tpu.memory_space<vmem>>, vector<32x32xbf16>
    %c0_3 = arith.constant 0 : index
    %c0_4 = arith.constant 0 : index
    %2 = vector.load %arg5[%c0_3, %c0_4] : memref<32x32xbf16, #tpu.memory_space<vmem>>, vector<32x32xbf16>
    %c0_5 = arith.constant 0 : index
    %c0_6 = arith.constant 0 : index
    %3 = vector.load %arg4[%c0_5, %c0_6] : memref<32x1xf32, #tpu.memory_space<vmem>>, vector<32x1xf32>
    %c0_7 = arith.constant 0 : index
    %c0_8 = arith.constant 0 : index
    %4 = vector.load %arg6[%c0_7, %c0_8] : memref<32x1xf32, #tpu.memory_space<vmem>>, vector<32x1xf32>
    %c0_i32 = arith.constant 0 : i32
    %c32_i32 = arith.constant 32 : i32
    %5 = arith.addi %c0_i32, %c32_i32 : i32
    %c1_i32 = arith.constant 1 : i32
    scf.for %arg8 = %c0_i32 to %5 step %c1_i32  : i32 {
      %6 = arith.index_cast %arg8 : i32 to index
      %c0_10 = arith.constant 0 : index
      %c0_11 = arith.constant 0 : index
      %7 = vector.load %arg2[%6, %c0_10, %c0_11] : memref<32x32x128xf32, #tpu.memory_space<vmem>>, vector<1x32x128xf32>
      %8 = vector.shape_cast %7 : vector<1x32x128xf32> to vector<32x128xf32>
      %9 = arith.truncf %8 : vector<32x128xf32> to vector<32x128xbf16>
      %cst = arith.constant dense<0.000000e+00> : vector<32x128xf32>
      %10 = tpu.matmul %1, %9, %cst {dimension_numbers = #tpu.dot_dimension_numbers<[1], [0], [0], [1], [0, 0, 1, 1], [], []>} : vector<32x32xbf16>, vector<32x128xbf16>, vector<32x128xf32> -> vector<32x128xf32>
      %11 = vector.broadcast %3 : vector<32x1xf32> to vector<32x128xf32>
      %12 = arith.addf %10, %11 : vector<32x128xf32>
      %13 = arith.truncf %12 : vector<32x128xf32> to vector<32x128xbf16>
      %cst_12 = arith.constant dense<0.000000e+00> : vector<32x128xf32>
      %14 = tpu.matmul %2, %9, %cst_12 {dimension_numbers = #tpu.dot_dimension_numbers<[1], [0], [0], [1], [0, 0, 1, 1], [], []>} : vector<32x32xbf16>, vector<32x128xbf16>, vector<32x128xf32> -> vector<32x128xf32>
      %15 = arith.truncf %14 : vector<32x128xf32> to vector<32x128xbf16>
      %cst_13 = arith.constant dense<0.000000e+00> : vector<128x128xf32>
      %16 = tpu.matmul %9, %13, %cst_13 {dimension_numbers = #tpu.dot_dimension_numbers<[0], [0], [1], [1], [0, 1, 1, 1], [], []>} : vector<32x128xbf16>, vector<32x128xbf16>, vector<128x128xf32> -> vector<128x128xf32>
      %cst_14 = arith.constant dense<0xFF800000> : vector<128xf32>
      %17 = vector.multi_reduction <maximumf>, %16, %cst_14 [0] : vector<128x128xf32> to vector<128xf32>
      %18 = vector.shape_cast %17 : vector<128xf32> to vector<1x128xf32>
      %19 = vector.broadcast %18 : vector<1x128xf32> to vector<128x128xf32>
      %20 = arith.subf %16, %19 : vector<128x128xf32>
      %21 = math.exp %20 : vector<128x128xf32>
      %cst_15 = arith.constant dense<0.000000e+00> : vector<128xf32>
      %22 = vector.multi_reduction <add>, %21, %cst_15 [0] : vector<128x128xf32> to vector<128xf32>
      %23 = vector.shape_cast %22 : vector<128xf32> to vector<1x128xf32>
      %24 = tpu.reciprocal %23 {approx = true} : vector<1x128xf32> -> vector<1x128xf32>
      %25 = arith.truncf %21 : vector<128x128xf32> to vector<128x128xbf16>
      %cst_16 = arith.constant dense<0.000000e+00> : vector<32x128xf32>
      %26 = tpu.matmul %15, %25, %cst_16 {dimension_numbers = #tpu.dot_dimension_numbers<[1], [0], [0], [1], [0, 0, 1, 1], [], []>} : vector<32x128xbf16>, vector<128x128xbf16>, vector<32x128xf32> -> vector<32x128xf32>
      %27 = vector.broadcast %24 : vector<1x128xf32> to vector<32x128xf32>
      %28 = arith.mulf %26, %27 : vector<32x128xf32>
      %cst_17 = arith.constant dense<0.000000e+00> : vector<32x32xf32>
      %29 = tpu.matmul %8, %8, %cst_17 {dimension_numbers = #tpu.dot_dimension_numbers<[1], [1], [0], [0], [0, 0, 1, 0], [], []>} : vector<32x128xf32>, vector<32x128xf32>, vector<32x32xf32> -> vector<32x32xf32>
      %cst_18 = arith.constant dense<0xFF800000> : vector<32xf32>
      %30 = vector.multi_reduction <maximumf>, %29, %cst_18 [1] : vector<32x32xf32> to vector<32xf32>
      %31 = vector.shape_cast %30 : vector<32xf32> to vector<32x1xf32>
      %32 = vector.broadcast %31 : vector<32x1xf32> to vector<32x32xf32>
      %33 = arith.subf %32, %29 : vector<32x32xf32>
      %cst_19 = arith.constant dense<0xFF800000> : vector<32xf32>
      %34 = vector.multi_reduction <maximumf>, %33, %cst_19 [1] : vector<32x32xf32> to vector<32xf32>
      %35 = vector.shape_cast %34 : vector<32xf32> to vector<32x1xf32>
      %36 = vector.broadcast %35 : vector<32x1xf32> to vector<32x32xf32>
      %37 = arith.subf %33, %36 : vector<32x32xf32>
      %38 = math.exp %37 : vector<32x32xf32>
      %cst_20 = arith.constant dense<0.000000e+00> : vector<32xf32>
      %39 = vector.multi_reduction <add>, %38, %cst_20 [1] : vector<32x32xf32> to vector<32xf32>
      %40 = vector.shape_cast %39 : vector<32xf32> to vector<32x1xf32>
      %41 = tpu.reciprocal %40 {approx = true} : vector<32x1xf32> -> vector<32x1xf32>
      %42 = vector.broadcast %41 : vector<32x1xf32> to vector<32x32xf32>
      %43 = arith.mulf %38, %42 : vector<32x32xf32>
      %cst_21 = arith.constant dense<0.000000e+00> : vector<32x128xf32>
      %44 = tpu.matmul %43, %8, %cst_21 {dimension_numbers = #tpu.dot_dimension_numbers<[1], [0], [0], [1], [0, 0, 1, 1], [], []>} : vector<32x32xf32>, vector<32x128xf32>, vector<32x128xf32> -> vector<32x128xf32>
      %45 = arith.addf %28, %44 : vector<32x128xf32>
      %46 = vector.broadcast %4 : vector<32x1xf32> to vector<32x128xf32>
      %47 = arith.addf %45, %46 : vector<32x128xf32>
      %48 = vector.broadcast %0 : f32 to vector<32x128xf32>
      %49 = arith.mulf %48, %47 : vector<32x128xf32>
      %cst_22 = arith.constant 2.000000e+00 : f32
      %50 = vector.broadcast %cst_22 : f32 to vector<32x128xf32>
      %51 = arith.mulf %50, %8 : vector<32x128xf32>
      %52 = arith.addf %49, %51 : vector<32x128xf32>
      %53 = arith.index_cast %arg8 : i32 to index
      %c0_23 = arith.constant 0 : index
      %c0_24 = arith.constant 0 : index
      %54 = vector.load %arg7[%53, %c0_23, %c0_24] : memref<32x32x128xf32, #tpu.memory_space<vmem>>, vector<1x32x128xf32>
      %55 = vector.shape_cast %54 : vector<1x32x128xf32> to vector<32x128xf32>
      %56 = vector.shape_cast %52 : vector<32x128xf32> to vector<1x32x128xf32>
      tpu.vector_store %arg7[%53, %c0_23, %c0_24], %56 {strides = array<i32>} : memref<32x32x128xf32, #tpu.memory_space<vmem>>, vector<1x32x128xf32>,
    }
    %c32_i32_9 = arith.constant 32 : i32
    return
  }
  func.func @transform_0(%arg0: i32) -> (i32, i32) {
    %c0_i32 = arith.constant 0 : i32
    %c0_i32_0 = arith.constant 0 : i32
    %c0_i32_1 = arith.constant 0 : i32
    return %c0_i32, %c0_i32_0 : i32, i32
  }
  func.func @transform_1(%arg0: i32) -> (i32, i32, i32) {
    %c0_i32 = arith.constant 0 : i32
    %c0_i32_0 = arith.constant 0 : i32
    %c0_i32_1 = arith.constant 0 : i32
    return %arg0, %c0_i32, %c0_i32_0 : i32, i32, i32
  }
  func.func @transform_2(%arg0: i32) -> (i32, i32) {
    %c0_i32 = arith.constant 0 : i32
    %c0_i32_0 = arith.constant 0 : i32
    %c0_i32_1 = arith.constant 0 : i32
    return %c0_i32, %c0_i32_0 : i32, i32
  }
  func.func @transform_3(%arg0: i32) -> (i32, i32) {
    %c0_i32 = arith.constant 0 : i32
    %c0_i32_0 = arith.constant 0 : i32
    %c0_i32_1 = arith.constant 0 : i32
    return %c0_i32, %c0_i32_0 : i32, i32
  }
  func.func @transform_4(%arg0: i32) -> (i32, i32) {
    %c0_i32 = arith.constant 0 : i32
    %c0_i32_0 = arith.constant 0 : i32
    %c0_i32_1 = arith.constant 0 : i32
    return %c0_i32, %c0_i32_0 : i32, i32
  }
  func.func @transform_5(%arg0: i32) -> (i32, i32) {
    %c0_i32 = arith.constant 0 : i32
    %c0_i32_0 = arith.constant 0 : i32
    %c0_i32_1 = arith.constant 0 : i32
    return %c0_i32, %c0_i32_0 : i32, i32
  }
  func.func @transform_6(%arg0: i32) -> (i32, i32, i32) {
    %c0_i32 = arith.constant 0 : i32
    %c0_i32_0 = arith.constant 0 : i32
    %c0_i32_1 = arith.constant 0 : i32
    return %arg0, %c0_i32, %c0_i32_0 : i32, i32, i32
  }
}

</mosaic_0001>

<bundles_post_ra>
// kernel: tpu_custom_call.1
= control target key start
LH: loop header
LB: loop body
LE: loop exit
PB: predicated region body
PF: predicated region fallthrough
CT: control target
= control target key end

     0   :  { %s2011_s0 = inlined_call_operand.<no memory space> [shape: f32[1,1], index: 0, kind: input, shape index: {}]   ;;  %s2012_s1 = inlined_call_operand.hbm [shape: f32[64,32,128], index: 1, kind: input, shape index: {}]   ;;  %s2013_s2 = inlined_call_operand.vmem [shape: bf16[32,32], index: 2, kind: input, shape index: {}]   ;;  %s2014_s3 = inlined_call_operand.vmem [shape: f32[32,1], index: 3, kind: input, shape index: {}]   ;;  %s2015_s4 = inlined_call_operand.vmem [shape: bf16[32,32], index: 4, kind: input, shape index: {}]   ;;  %s2016_s5 = inlined_call_operand.vmem [shape: f32[32,1], index: 5, kind: input, shape index: {}]   ;;  %s2017_s6 = inlined_call_operand.hbm [shape: f32[64,32,128], index: 6, kind: output, shape index: {}]  }
   0x1   :  { %11 = sst [smem:[#allocation2]] %s2011_s0 }
   0x2   :  { %12 = vsyncpa [#allocation4], 0 }
   0x3   :  { %14 = vsyncpa [#allocation4 + $0x1], 0 }
   0x4   :  { %15 = vsyncpa [#allocation5], 0 }
   0x5   :  { %17 = vsyncpa [#allocation5 + $0x1], 0  ;;  %s1582_s23 = smov 0   ;;  %s1584_s24 = smov 0  }
   0x6   :  { %s1586_s25 = smov 0   ;;  %s1588_s26 = smov 0  }
   0x7 LB: > { %s1603_s0 = sadd.s32 4294967295, %s1531_s26   ;;  %s1135_s27 = sadd.s32 4294967294, %s1531_s26   ;;  %s1531_s26 = sphi %s1588_s26, %s2030_s26   ;;  %s1527_s25 = sphi %s1586_s25, %s2029_s25   ;;  %s1523_s24 = sphi %s1584_s24, %s2028_s24   ;;  %s1519_s23 = sphi %s1582_s23, %s2027_s23  }
   0x8   : > { %s1607_s28 = sadd.s32 1, %s1531_s26   ;;  %s51_s29 = sadd.s32 1, %s1527_s25 }
   0x9   : > { %s48_s30 = ssub.s32 %s1531_s26, %s1607_s28  ;;  %p58_p0 = scmp.ne.s32.totalorder %s1527_s25, %s1523_s24 }
   0xa   : > { %p49_p1 = scmp.eq.s32.totalorder %s48_s30, 0  ;;  %p59_p2 = scmp.eq.s32.totalorder %s1531_s26, 0 }
   0xb   : > { %p64_p3 = scmp.ne.s32.totalorder %s1523_s24, %s1519_s23  ;;  %p65_p4 = scmp.eq.s32.totalorder %s1603_s0, 0 }
   0xc   : > { %s1619_s7 = scalar_select %p49_p1, %s1527_s25, %s51_s29  }
   0xd   : > { %p1621_p5 = por %p59_p2, %p58_p0  ;;  %p1625_p6 = por %p65_p4, %p64_p3 }
   0xe   : > { %p172_p7 = scmp.eq.s32.totalorder %s1603_s0, 1  ;;  %p178_p8 = scmp.eq.s32.totalorder %s1135_s27, 1 }
   0xf   : > { %p1332_p10 = scmp.lt.s32.totalorder %s1531_s26, 2  ;;  %s213_s12 = sand.u32 1, %s1527_s25  }
  0x10   : > { %p1632_p11 = por %p172_p7, %p58_p0  ;;  %p1636_p12 = por %p178_p8, %p64_p3 }
  0x11   : > { %s1173_s13 = sshll.u32 %s1531_s26, 14  ;;  %s1138_s14 = sshll.u32 %s213_s12, 10 }
  0x12   : > { %s2021_s10 = scalar_select %p1632_p11, 1, 0 }
  0x13   : > { %s2022_s11 = scalar_select %p1636_p12, 1, 0 }
  0x14   : > { %s1645_s17 = scalar_lea.hbm %s2012_s1, %s1173_s13  ;;  %s217_s18 = scalar_lea.vmem [#allocation3], %s1138_s14 }
  0x15   : > { %s225_s19 = sshll.u32 %s217_s18, 4  ;;  %p1649_p13 = pnand %p1332_p10, %p1621_p5  ;;  %s1653_s19 = int_to_ptr.vmem [resolvable:$true] %s225_s19 }
  0x16   : > { %s1655_s21 = scalar_lea.sflag [#allocation4], %s213_s12  ;;  %s1431_s22 = scalar_lea.hbm %s1645_s17, 16384 }
  0x17   : > { %p1432_p0 = scmp.ne.s32.totalorder %s1645_s17, %s1431_s22  ;;  %p1433_p1 = pneg %p1649_p13 }
  0x18   : > { %s1436_s30 = scalar_lea.hbm %s2012_s1, 32768  ;;  %p1437_p4 = scmp.lt.u32.totalorder %s1645_s17, %s2012_s1 }
  0x19   : > { %p1434_p2 = pnand %p1433_p1, %p1432_p0  ;;  %p1438_p5 = scmp.lt.u32.totalorder %s1436_s30, %s1431_s22 }
  0x1a   : > { %p1440_p8 = scmp.lt.u32.totalorder %s1431_s22, %s1645_s17 }
  0x1b   : > { %p1435_p3 = pneg %p1434_p2  ;;  %p1439_p7 = por %p1438_p5, %p1437_p4 }
  0x1d   : > { %p1441_p10 = por %p1440_p8, %p1439_p7 }
  0x1f   : > { %p1442_p9 = pnand %p1441_p10, %p1435_p3 }
  0x21   : > { %1445 = shalt.err (!%p1442_p9)
}
  0x22   : > { %s1446_s12 = scalar_lea.vmem %s1653_s19, 16384  ;;  %s1537_s14 = smov [#allocation3]  }
  0x23   : > { %p1447_p0 = scmp.ne.s32.totalorder %s1653_s19, %s1446_s12  ;;  %s1451_s15 = sshll.u32 %s1537_s14, 4  ;;  %s1452_s15 = int_to_ptr.vmem [resolvable:$false] %s1451_s15 }
  0x24   : > { %s1453_s16 = scalar_lea.vmem %s1452_s15, 32768  ;;  %p1454_p11 = scmp.lt.s32.totalorder %s1653_s19, %s1452_s15 }
  0x25   : > { %p1449_p2 = pnand %p1447_p0, %p1433_p1  ;;  %p1455_p4 = scmp.lt.s32.totalorder %s1453_s16, %s1446_s12 }
  0x27   : > { %p1450_p12 = pneg %p1449_p2  ;;  %p1456_p5 = por %p1455_p4, %p1454_p11 }
  0x29   : > { %p1457_p7 = pnand %p1456_p5, %p1450_p12 }
  0x2b   : > { %1460 = shalt.err (!%p1457_p7)
}
  0x2c   : > { %s1538_s18 = smov 128   ;;  %s1539_s22 = smov 8  }
  0x2d   : > { %1327 = dma.hbm_to_vmem [thread:$0]  (!%p1649_p13), %s1645_s17, 16384, %s1653_s19, %s1655_s21, %s1538_s18, %s1538_s18, %s1539_s22  }
  0x2e   : > { %p1142_p9 = scmp.ge.s32.totalorder %s1531_s26, 1  ;;  %p233_p1 = scmp.lt.s32.totalorder %s1531_s26, 3 }
  0x30   : > { %p234_p3 = pnand %p1142_p9, %p233_p1 }
  0x31   : > { %s1686_s27 = sand.u32 (!%p234_p3), 1, %s1523_s24  }
  0x32   : > { %237 = sbr.rel (%p234_p3) target bundleno = 1255 (0x4e7), region = 44  ;;  %s1143_s29 = sshll.u32 (!%p234_p3), %s1686_s27, 10 }
  0x33   : > { %s240_s30 = scalar_lea.sflag (!%p234_p3), [#allocation4], %s1686_s27  ;;  %s1690_s8 = scalar_lea.vmem (!%p234_p3), [#allocation3], %s1143_s29 }
  0x39   : > { %1510 = dma.done.wait (%p1625_p6), %s240_s30, 16384  }
  0x3a   : > { %1512 = vsyncadd (%p1625_p6), %s240_s30, 4294950912  ;;  %s1696_s17 = sld [smem:[#allocation2]]  ;;  %v1701_v0 = vld [vmem:[%s2013_s2] sm:$0xf]  ;;  %v1706_v1 = vld [vmem:[%s2013_s2 + $0x4] sm:$0xf] }
  0x3b   : > { %v1711_v2 = vld [vmem:[%s2013_s2 + $0x8] sm:$0xf]  ;;  %v1716_v3 = vld [vmem:[%s2013_s2 + $0xc] sm:$0xf]  ;;  %v1721_v4 = vld [vmem:[%s2015_s4] sm:$0xf] }
  0x3c   : > { %v1726_v5 = vld [vmem:[%s2015_s4 + $0x4] sm:$0xf]  ;;  %v1731_v6 = vld [vmem:[%s2015_s4 + $0x8] sm:$0xf]  ;;  %v1736_v7 = vld [vmem:[%s2015_s4 + $0xc] sm:$0xf] }
  0x3d   : > { %v1741_v8 = vld [vmem:[%s2014_s3] sm:$0xff]  ;;  %v1746_v9 = vld [vmem:[%s2014_s3 + $0x8] sm:$0xff]  ;;  %v1751_v10 = vld [vmem:[%s2014_s3 + $0x10] sm:$0xff]  ;;  %s1778_s16 = scalar_lea.vmem [#allocation6], %s1143_s29  ;;  %s1780_s18 = smov 0  }
  0x3e   : > { %v1756_v11 = vld [vmem:[%s2014_s3 + $0x18] sm:$0xff]  ;;  %v1761_v12 = vld [vmem:[%s2016_s5] sm:$0xff]  ;;  %v1766_v13 = vld [vmem:[%s2016_s5 + $0x8] sm:$0xff] }
  0x3f   : > { %v1771_v14 = vld [vmem:[%s2016_s5 + $0x10] sm:$0xff]  ;;  %v1776_v15 = vld [vmem:[%s2016_s5 + $0x18] sm:$0xff] }
  0x40 LB: >> { %v1146_v16 = vcombine.low %v1701_v0, %v1706_v1  ;;  %vm336_vm0 = vcmask 261120   ;;  %v1540_v17 = vmov 0   ;;  %s1145_s22 = sshll.u32 %s1535_s18, 5  ;;  %v1147_v24 = vcombine.low %v1711_v2, %v1716_v3  ;;  %s297_s18 = sadd.s32 1, %s1535_s18   ;;  %s1535_s18 = sphi %s1780_s18, %s297_s18  }
  0x41   : >> { %1379 = vset.pattern.permute.xlu0 %v1540_v17  ;;  %1380 = vset.pattern.permute.xlu1 %v1540_v17  ;;  %s299_s29 = scalar_lea.vmem %s1690_s8, %s1145_s22 [#allocation3]  ;;  %v1150_v28 = vcombine.low %v1721_v4, %v1726_v5  ;;  %v1151_v29 = vcombine.low %v1731_v6, %v1736_v7  ;;  %s1033_s30 = scalar_lea.vmem %s1778_s16, %s1145_s22 [#allocation6] }
  0x42   : >> { %1224 = vmatprep.mubr.msk.bf16.mxu0 %vm336_vm0, %v1146_v16  ;;  %308 = vperm.xlu0 %1379, %v1741_v8   ;;  %v1794_v18 = vld [vmem:[%s299_s29] sm:$0xff]  ;;  %v1796_v19 = vld [vmem:[%s299_s29 + $0x8] sm:$0xff]  ;;  %v1798_v20 = vld [vmem:[%s299_s29 + $0x10] sm:$0xff]  ;;  %p294_p6 = scmp.ge.s32.totalorder %s297_s18, 32  }
  0x43   : >> { %318 = vperm.xlu1 %1380, %v1751_v10   ;;  %v1802_v21 = vpack.c.bf16 %v1796_v19, %v1794_v18  ;;  %v1804_v22 = vld [vmem:[%s299_s29 + $0x18] sm:$0xff]  ;;  %1232 = vmatprep.mubr.msk.bf16.mxu1 %vm336_vm0, %v1150_v28  ;;  %s1175_s19 = sshll.u32 (%p294_p6), %s1603_s0, 14  ;;  %s1053_s12 = sshll.u32 (%p294_p6), %s1778_s16, 4  ;;  %s1967_s12 = int_to_ptr.vmem [resolvable:$true] %s1053_s12 }
  0x44   : >> { %v1808_v23 = vpack.c.bf16 %v1804_v22, %v1798_v20  ;;  %s1964_s13 = scalar_lea.hbm (%p294_p6), %s2017_s6, %s1175_s19  ;;  %s1039_s14 = scalar_lea.sflag (%p294_p6), [#allocation5], %s1686_s27 }
  0x45   : >> { %1220 = vmatprep.subr.bf16.mxu0 %v1802_v21  ;;  %1228 = vmatprep.subr.bf16.mxu1 %v1802_v21  ;;  %s1461_s15 = scalar_lea.vmem (%p294_p6), %s1967_s12, 16384  ;;  %p2024_p12 = scmp.ne.s32.totalorder (%p294_p6), %s2021_s10, 0 }
  0x46   : >> { %313 = vperm.xlu0 %1379, %v1746_v9   ;;  %1221 = vmatpush3.bf16.msra.mxu0 %v1802_v21  ;;  %p1462_p11 = scmp.ne.s32.totalorder (%p294_p6), %s1967_s12, %s1461_s15  ;;  %s1541_s8 = smov (%p294_p6), [#allocation6]  }
  0x47   : >> { %323 = vperm.xlu1 %1380, %v1756_v11   ;;  %1222 = vmatprep.subr.bf16.mxu0 %v1808_v23 }
  0x48   : >> { %1229 = vmatpush3.bf16.msra.mxu1 %v1802_v21  ;;  %p1463_p13 = pnand (%p294_p6), %p1462_p11, %p2024_p12 }
  0x49   : >> { %1230 = vmatprep.subr.bf16.mxu1 %v1808_v23 }
  0x4a   : >> { %1223 = vmatpush3.bf16.msra.mxu0 %v1808_v23  ;;  %p1464_p8 = pneg (%p294_p6), %p1463_p13 }
  0x4c   : >> { %1231 = vmatpush3.bf16.msra.mxu1 %v1808_v23 }
  0x4d   : >> { %1225 = vmatmul.mubr.msk.bf16.vlgmr.msra.gmra.mrb[0].mxu0 %vm336_vm0, %v1147_v24 }
  0x4f   : >> { %1233 = vmatmul.mubr.msk.bf16.vlgmr.msra.gmra.mrb[0].mxu1 %vm336_vm0, %v1151_v29 }
  0x64   : >> { %461 = vxpose.xlu0.c.b16.start [1/2] (short) %v1802_v21, 128 }
  0x68   : >> { %462 = vxpose.xlu0.c.b16.end [2/2] (short) %v1808_v23, 128 }
  0xc1   : >> { %v309_v25 = vpop.permute.xlu0 %308 }
  0xc2   : >> { %v319_v30 = vpop.permute.xlu1 %318 }
  0xc5   : >> { %v314_v26 = vpop.permute.xlu0 %313 }
  0xc6   : >> { %v324_v31 = vpop.permute.xlu1 %323 }
  0xca   : >> { %v469_v27 = vpop.trf.xlu0 }
  0xcb   : >> { %1240 = vmatprep.mubr.msk.bf16.mxu0 %vm336_vm0, %v469_v27 }
  0xce   : >> { %v470_v33 = vpop.trf.xlu0 }
  0xd2   : >> { %v471_v43 = vpop.trf.xlu0 }
  0xd6   : >> { %v472_v44 = vpop.trf.xlu0 }
  0xda   : >> { %v473_v45 = vpop.trf.xlu0 }
  0xde   : >> { %v474_v46 = vpop.trf.xlu0 }
  0xe2   : >> { %v475_v47 = vpop.trf.xlu0 }
  0xe6   : >> { %v476_v48 = vpop.trf.xlu0 }
 0x120   : >> { %v1226_v32 = vpop.f32.mrb[0].mxu0 }
 0x121   : >> { %v377_v34 = vpop.f32.mrb[1].mxu0  ;;  %v386_v36 = vadd.f32 %v1226_v32, %v319_v30 }
 0x122   : >> { %v1227_v35 = vpop.f32.mrb[2].mxu0  ;;  %v378_v39 = vadd.f32 %v377_v34, %v309_v25  ;;  %v1847_v49 = vpop.f32.mrb[0].mxu1 }
 0x123   : >> { %v389_v37 = vadd.f32 %v1227_v35, %v324_v31  ;;  %v380_v38 = vpop.f32.mrb[3].mxu0  ;;  %v444_v50 = vpop.f32.mrb[1].mxu1 }
 0x124   : >> { %v381_v40 = vadd.f32 %v380_v38, %v314_v26  ;;  %v1849_v51 = vpop.f32.mrb[2].mxu1 }
 0x125   : >> { %v393_v41 = vpack.c.bf16 %v389_v37, %v386_v36  ;;  %v460_v52 = vpack.c.bf16 %v1849_v51, %v1847_v49  ;;  %v447_v53 = vpop.f32.mrb[3].mxu1 }
 0x126   : >> { %v392_v42 = vpack.c.bf16 %v381_v40, %v378_v39  ;;  %v459_v54 = vpack.c.bf16 %v447_v53, %v444_v50 }
 0x128   : >> { %1236 = vmatprep.subr.bf16.mxu0 %v392_v42  ;;  %1272 = vmatprep.mubr.bf16.mxu1 %v459_v54 }
 0x129   : >> { %1237 = vmatpush3.bf16.msra.mxu0 %v392_v42 }
 0x12a   : >> { %1238 = vmatprep.subr.bf16.mxu0 %v393_v41 }
 0x12d   : >> { %1239 = vmatpush3.bf16.msra.mxu0 %v393_v41 }
 0x12e   : >> { %1305 = vmatprep.subr.bf16.mxu0 %v1802_v21 }
 0x130   : >> { %1241 = vmatmul.mubr.msk.bf16.vlgmr.msra.gmra.mrb[4].mxu0 %vm336_vm0, %v470_v33 }
 0x131   : >> { %1244 = vmatprep.mubr.msk.bf16.mxu0 %vm336_vm0, %v471_v43 }
 0x136   : >> { %1307 = vmatpush3.bf16.xpose.msra.mxu0 %v1802_v21 }
 0x137   : >> { %1309 = vmatprep.subr.bf16.mxu0 %v1808_v23 }
 0x138   : >> { %1245 = vmatmul.mubr.msk.bf16.gmra.mrb[8].mxu0 %vm336_vm0, %v472_v44 }
 0x139   : >> { %1248 = vmatprep.mubr.msk.bf16.mxu0 %vm336_vm0, %v473_v45 }
 0x13e   : >> { %1311 = vmatpush3.bf16.xpose.msra.mxu0 %v1808_v23 }
 0x140   : >> { %1249 = vmatmul.mubr.msk.bf16.gmra.mrb[12].mxu0 %vm336_vm0, %v474_v46 }
 0x141   : >> { %1252 = vmatprep.mubr.msk.bf16.mxu0 %vm336_vm0, %v475_v47 }
 0x148   : >> { %1253 = vmatmul.mubr.msk.bf16.gmra.mrb[16].mxu0 %vm336_vm0, %v476_v48 }
 0x149   : >> { %1284 = vmatprep.mubr.f32.mxu0 %v1794_v18 }
 0x150   : >> { %1285 = vmatmul.mubr.f32.vlgmr.msra.gmra.mrb[20].mxu0 %v1796_v19 }
 0x151   : >> { %1287 = vmatprep.mubr.f32.mxu0 %v1798_v20 }
 0x154   : >> { %1288 = vmatmul.mubr.f32.gmra.mrb[22].mxu0 %v1804_v22 }
 0x203   : >> { %v1853_v55 = vpop.f32.mrb[4].mxu0 }
 0x204   : >> { %v535_v56 = vpop.f32.mrb[5].mxu0 }
 0x205   : >> { %v1855_v57 = vpop.f32.mrb[6].mxu0 }
 0x206   : >> { %v538_v58 = vpop.f32.mrb[7].mxu0 }
 0x20b   : >> { %v1857_v59 = vpop.f32.mrb[8].mxu0 }
 0x20c   : >> { %v600_v60 = vmax.f32 %v1853_v55, %v1857_v59  ;;  %v1861_v61 = vpop.f32.mrb[9].mxu0 }
 0x20d   : >> { %v598_v62 = vmax.f32 %v535_v56, %v1861_v61  ;;  %v1864_v63 = vpop.f32.mrb[10].mxu0 }
 0x20e   : >> { %v601_v16 = vmax.f32 %v1855_v57, %v1864_v63  ;;  %v554_v17 = vpop.f32.mrb[11].mxu0 }
 0x20f   : >> { %v599_v24 = vmax.f32 %v538_v58, %v554_v17 }
 0x213   : >> { %v1868_v25 = vpop.f32.mrb[12].mxu0 }
 0x214   : >> { %v604_v26 = vmax.f32 %v600_v60, %v1868_v25  ;;  %v1871_v27 = vpop.f32.mrb[13].mxu0 }
 0x215   : >> { %v602_v28 = vmax.f32 %v598_v62, %v1871_v27  ;;  %v1874_v29 = vpop.f32.mrb[14].mxu0 }
 0x216   : >> { %v605_v30 = vmax.f32 %v601_v16, %v1874_v29  ;;  %v570_v31 = vpop.f32.mrb[15].mxu0 }
 0x217   : >> { %v603_v32 = vmax.f32 %v599_v24, %v570_v31 }
 0x21b   : >> { %v1877_v33 = vpop.f32.mrb[16].mxu0 }
 0x21c   : >> { %v608_v34 = vmax.f32 %v604_v26, %v1877_v33  ;;  %v1880_v35 = vpop.f32.mrb[17].mxu0 }
 0x21d   : >> { %v606_v36 = vmax.f32 %v602_v28, %v1880_v35  ;;  %v1883_v37 = vpop.f32.mrb[18].mxu0 }
 0x21e   : >> { %v609_v38 = vmax.f32 %v605_v30, %v1883_v37  ;;  %v586_v39 = vpop.f32.mrb[19].mxu0 }
 0x21f   : >> { %v607_v40 = vmax.f32 %v603_v32, %v586_v39 }
 0x220   : >> { %v611_v41 = vmax.f32 %v608_v34, %v609_v38 }
 0x221   : >> { %v610_v42 = vmax.f32 %v606_v36, %v607_v40 }
 0x223   : >> { %v612_v43 = vmax.f32 %v610_v42, %v611_v41  ;;  %v1886_v44 = vpop.f32.mrb[20].mxu0 }
 0x224   : >> { %v1888_v45 = vpop.f32.mrb[21].mxu0  ;;  %v838_v46 = vsel %vm336_vm0, %v1886_v44, -inf }
 0x225   : >> { %v613_v47 = vrot.slane %v612_v43, 4  ;;  %839 = vmax.xlane.f32.xlu0 %v838_v46  ;;  %v835_v48 = vsel %vm336_vm0, %v1888_v45, -inf }
 0x226   : >> { %836 = vmax.xlane.f32.xlu1 %v835_v48 }
 0x227   : >> { %v614_v50 = vmax.f32 %v612_v43, %v613_v47  ;;  %v1894_v53 = vpop.f32.mrb[22].mxu0 }
 0x228   : >> { %v1896_v54 = vpop.f32.mrb[23].mxu0  ;;  %v844_v26 = vsel %vm336_vm0, %v1894_v53, -inf }
 0x229   : >> { %v615_v60 = vrot.slane %v614_v50, 2  ;;  %v841_v62 = vsel %vm336_vm0, %v1896_v54, -inf }
 0x22a   : >> { %842 = vmax.xlane.f32.xlu1 %v841_v62 }
 0x22b   : >> { %v616_v16 = vmax.f32 %v614_v50, %v615_v60 }
 0x22d   : >> { %v617_v24 = vrot.slane %v616_v16, 1 }
 0x22e   : >> { %845 = vmax.xlane.f32.xlu1 %v844_v26 }
 0x22f   : >> { %v618_v28 = vmax.f32 %v616_v16, %v617_v24 }
 0x231   : >> { %v619_v30 = vsub.f32 %v535_v56, %v618_v28  ;;  %v620_v32 = vsub.f32 %v538_v58, %v618_v28  ;;  %v621_v34 = vsub.f32 %v1853_v55, %v618_v28  ;;  %v622_v36 = vsub.f32 %v1855_v57, %v618_v28 }
 0x232   : >> { %v623_v38 = vsub.f32 %v1861_v61, %v618_v28  ;;  %v624_v40 = vsub.f32 %v554_v17, %v618_v28  ;;  %v625_v41 = vsub.f32 %v1857_v59, %v618_v28  ;;  %v626_v42 = vsub.f32 %v1864_v63, %v618_v28 }
 0x233   : >> { %v627_v43 = vsub.f32 %v1871_v27, %v618_v28  ;;  %v628_v46 = vsub.f32 %v570_v31, %v618_v28  ;;  %v629_v47 = vsub.f32 %v1868_v25, %v618_v28  ;;  %v630_v48 = vsub.f32 %v1874_v29, %v618_v28 }
 0x234   : >> { %v631_v56 = vsub.f32 %v1880_v35, %v618_v28  ;;  %v632_v58 = vsub.f32 %v586_v39, %v618_v28  ;;  %v635_v55 = vmul.f32 1.442695, %v619_v30  ;;  %v637_v50 = vmul.f32 1.442695, %v620_v32 }
 0x235   : >> { %v639_v57 = vmul.f32 1.442695, %v621_v34  ;;  %v641_v60 = vmul.f32 1.442695, %v622_v36  ;;  %v633_v61 = vsub.f32 %v1877_v33, %v618_v28  ;;  %v643_v59 = vmul.f32 1.442695, %v623_v38 }
 0x236   : >> { %1381 = vpow2.f32 %v635_v55  ;;  %v645_v63 = vmul.f32 1.442695, %v624_v40  ;;  %v647_v17 = vmul.f32 1.442695, %v625_v41  ;;  %v649_v27 = vmul.f32 1.442695, %v626_v42 }
 0x237   : >> { %1383 = vpow2.f32 %v637_v50  ;;  %v634_v25 = vsub.f32 %v1883_v37, %v618_v28  ;;  %v651_v29 = vmul.f32 1.442695, %v627_v43  ;;  %v653_v31 = vmul.f32 1.442695, %v628_v46 }
 0x238   : >> { %1385 = vpow2.f32 %v639_v57  ;;  %v655_v35 = vmul.f32 1.442695, %v629_v47  ;;  %v657_v39 = vmul.f32 1.442695, %v630_v48  ;;  %v659_v33 = vmul.f32 1.442695, %v631_v56 }
 0x239   : >> { %1387 = vpow2.f32 %v641_v60  ;;  %v661_v62 = vmul.f32 1.442695, %v632_v58  ;;  %v663_v24 = vmul.f32 1.442695, %v633_v61  ;;  %v665_v30 = vmul.f32 1.442695, %v634_v25 }
 0x23a   : >> { %1389 = vpow2.f32 %v643_v59 }
 0x23b   : >> { %1391 = vpow2.f32 %v645_v63 }
 0x23c   : >> { %1393 = vpow2.f32 %v647_v17 }
 0x23d   : >> { %1395 = vpow2.f32 %v649_v27 }
 0x23e   : >> { %1397 = vpow2.f32 %v651_v29 }
 0x23f   : >> { %1399 = vpow2.f32 %v653_v31 }
 0x240   : >> { %v1382_v16 = vpop.eup %1381  ;;  %1401 = vpow2.f32 %v655_v35 }
 0x241   : >> { %v1384_v26 = vpop.eup %1383  ;;  %1403 = vpow2.f32 %v657_v39 }
 0x242   : >> { %v1386_v32 = vpop.eup %1385  ;;  %1405 = vpow2.f32 %v659_v33  ;;  %v667_v37 = vadd.f32 %v1384_v26, %v1382_v16  ;;  %v689_v28 = vpack.c.bf16 %v1384_v26, %v1382_v16 }
 0x243   : >> { %v1388_v34 = vpop.eup %1387  ;;  %1407 = vpow2.f32 %v661_v62 }
 0x244   : >> { %v1390_v36 = vpop.eup %1389  ;;  %v668_v38 = vadd.f32 %v1386_v32, %v667_v37  ;;  %1256 = vmatprep.subr.bf16.mxu1 %v689_v28  ;;  %v690_v40 = vpack.c.bf16 %v1388_v34, %v1386_v32  ;;  %1409 = vpow2.f32 %v663_v24 }
 0x245   : >> { %v1392_v41 = vpop.eup %1391  ;;  %1257 = vmatpush3.bf16.msra.mxu1 %v689_v28  ;;  %1411 = vpow2.f32 %v665_v30 }
 0x246   : >> { %v1394_v42 = vpop.eup %1393  ;;  %v669_v43 = vadd.f32 %v1388_v34, %v668_v38  ;;  %1258 = vmatprep.subr.bf16.mxu1 %v690_v40  ;;  %v691_v46 = vpack.c.bf16 %v1392_v41, %v1390_v36 }
 0x247   : >> { %v1396_v47 = vpop.eup %1395 }
 0x248   : >> { %v1398_v48 = vpop.eup %1397  ;;  %v670_v56 = vadd.f32 %v1390_v36, %v669_v43  ;;  %v692_v58 = vpack.c.bf16 %v1396_v47, %v1394_v42 }
 0x249   : >> { %v1400_v55 = vpop.eup %1399  ;;  %1259 = vmatpush3.bf16.msra.mxu1 %v690_v40 }
 0x24a   : >> { %v1402_v50 = vpop.eup %1401  ;;  %v671_v57 = vadd.f32 %v1392_v41, %v670_v56  ;;  %1260 = vmatprep.subr.bf16.mxu1 %v691_v46  ;;  %v693_v60 = vpack.c.bf16 %v1400_v55, %v1398_v48 }
 0x24b   : >> { %v1404_v61 = vpop.eup %1403 }
 0x24c   : >> { %v1406_v59 = vpop.eup %1405  ;;  %v672_v63 = vadd.f32 %v1394_v42, %v671_v57  ;;  %v694_v17 = vpack.c.bf16 %v1404_v61, %v1402_v50 }
 0x24d   : >> { %v1408_v27 = vpop.eup %1407  ;;  %1261 = vmatpush3.bf16.msra.mxu1 %v691_v46 }
 0x24e   : >> { %v1410_v25 = vpop.eup %1409  ;;  %v673_v29 = vadd.f32 %v1396_v47, %v672_v63  ;;  %1262 = vmatprep.subr.bf16.mxu1 %v692_v58  ;;  %v695_v31 = vpack.c.bf16 %v1408_v27, %v1406_v59 }
 0x24f   : >> { %v1412_v35 = vpop.eup %1411 }
 0x250   : >> { %v674_v39 = vadd.f32 %v1398_v48, %v673_v29  ;;  %v696_v33 = vpack.c.bf16 %v1412_v35, %v1410_v25 }
 0x251   : >> { %1263 = vmatpush3.bf16.msra.mxu1 %v692_v58 }
 0x252   : >> { %v675_v62 = vadd.f32 %v1400_v55, %v674_v39  ;;  %1264 = vmatprep.subr.bf16.mxu1 %v693_v60 }
 0x254   : >> { %v676_v16 = vadd.f32 %v1402_v50, %v675_v62 }
 0x255   : >> { %1265 = vmatpush3.bf16.msra.mxu1 %v693_v60 }
 0x256   : >> { %v677_v24 = vadd.f32 %v1404_v61, %v676_v16  ;;  %1266 = vmatprep.subr.bf16.mxu1 %v694_v17 }
 0x258   : >> { %v678_v26 = vadd.f32 %v1406_v59, %v677_v24 }
 0x259   : >> { %1267 = vmatpush3.bf16.msra.mxu1 %v694_v17 }
 0x25a   : >> { %v679_v30 = vadd.f32 %v1408_v27, %v678_v26  ;;  %1268 = vmatprep.subr.bf16.mxu1 %v695_v31 }
 0x25c   : >> { %v680_v32 = vadd.f32 %v1410_v25, %v679_v30 }
 0x25d   : >> { %1269 = vmatpush3.bf16.msra.mxu1 %v695_v31 }
 0x25e   : >> { %v681_v37 = vadd.f32 %v1412_v35, %v680_v32  ;;  %1270 = vmatprep.subr.bf16.mxu1 %v696_v33 }
 0x261   : >> { %1271 = vmatpush3.bf16.msra.mxu1 %v696_v33 }
 0x262   : >> { %1313 = vmatprep.subr.bf16.mxu1 %v1802_v21 }
 0x264   : >> { %1273 = vmatmul.mubr.bf16.vlgmr.msra.gmra.mrb[4].mxu1 %v460_v52 }
 0x265   : >> { %1315 = vmatpush3.bf16.msra.mxu1 %v1802_v21 }
 0x266   : >> { %1317 = vmatprep.subr.bf16.mxu1 %v1808_v23 }
 0x269   : >> { %1319 = vmatpush3.bf16.msra.mxu1 %v1808_v23 }
 0x2b2   : >> { %v840_v28 = vpop.xlane.xlu0 %839 }
 0x2b3   : >> { %v848_v34 = vsub.f32 %v840_v28, %v1886_v44  ;;  %v837_v36 = vpop.xlane.xlu1 %836  ;;  %v682_v44 = vrot.slane %v681_v37, 4 }
 0x2b4   : >> { %v847_v38 = vsub.f32 %v837_v36, %v1888_v45 }
 0x2b5   : >> { %v854_v40 = vsel %vm336_vm0, %v848_v34, -inf  ;;  %v683_v45 = vadd.f32 %v682_v44, %v681_v37 }
 0x2b6   : >> { %855 = vmax.xlane.f32.xlu1 %v854_v40  ;;  %v851_v49 = vsel %vm336_vm0, %v847_v38, -inf }
 0x2b7   : >> { %v843_v41 = vpop.xlane.xlu1 %842  ;;  %v684_v43 = vrot.slane %v683_v45, 2 }
 0x2b8   : >> { %v849_v42 = vsub.f32 %v843_v41, %v1896_v54 }
 0x2b9   : >> { %v685_v46 = vadd.f32 %v684_v43, %v683_v45 }
 0x2ba   : >> { %852 = vmax.xlane.f32.xlu1 %v851_v49  ;;  %v857_v23 = vsel %vm336_vm0, %v849_v42, -inf }
 0x2bb   : >> { %v846_v21 = vpop.xlane.xlu1 %845  ;;  %v686_v47 = vrot.slane %v685_v46, 1 }
 0x2bc   : >> { %v850_v51 = vsub.f32 %v846_v21, %v1894_v53 }
 0x2bd   : >> { %v687_v48 = vadd.f32 %v686_v47, %v685_v46 }
 0x2be   : >> { %858 = vmax.xlane.f32.xlu1 %v857_v23  ;;  %v860_v52 = vsel %vm336_vm0, %v850_v51, -inf }
 0x2bf   : >> { %1413 = vrcp.f32 %v687_v48 }
 0x2c2   : >> { %861 = vmax.xlane.f32.xlu1 %v860_v52 }
 0x2c9   : >> { %v1414_v54 = vpop.eup %1413 }
 0x337   : >> { %v1274_v56 = vpop.f32.mrb[4].mxu1 }
 0x338   : >> { %v1928_v58 = vmul.f32 %v1414_v54, %v1274_v56  ;;  %v731_v55 = vpop.f32.mrb[5].mxu1 }
 0x339   : >> { %v1930_v50 = vmul.f32 %v1414_v54, %v731_v55  ;;  %v1275_v53 = vpop.f32.mrb[6].mxu1  ;;  %v1020_v55 = vstv %s1696_s17  ;;  %s1465_s17 = sshll.u32 (%p294_p6), %s1541_s8, 4  ;;  %s1466_s17 = int_to_ptr.vmem [resolvable:$false] %s1465_s17 }
 0x33a   : >> { %v1932_v57 = vmul.f32 %v1414_v54, %v1275_v53  ;;  %v734_v60 = vpop.f32.mrb[7].mxu1  ;;  %s1467_s0 = scalar_lea.vmem (%p294_p6), %s1466_s17, 32768  ;;  %p1468_p10 = scmp.lt.s32.totalorder (%p294_p6), %s1967_s12, %s1466_s17 }
 0x33b   : >> { %v747_v61 = vmul.f32 %v1414_v54, %v734_v60  ;;  %p1469_p0 = scmp.lt.s32.totalorder (%p294_p6), %s1467_s0, %s1461_s15 }
 0x33d   : > { %p1470_p2 = por (%p294_p6), %p1469_p0, %p1468_p10 }
 0x33f   : > { %p1471_p4 = pnand (%p294_p6), %p1470_p2, %p1464_p8 }
 0x343   : >> { %v856_v59 = vpop.xlane.xlu1 %855 }
 0x344   : >> { %v864_v63 = vsub.f32 %v848_v34, %v856_v59 }
 0x346   : >> { %v869_v17 = vmul.f32 1.442695, %v864_v63  ;;  %v1026_v63 = vmul.f32 2.0, %v1796_v19  ;;  %v1028_v19 = vmul.f32 2.0, %v1804_v22 }
 0x347   : >> { %v853_v27 = vpop.xlane.xlu1 %852 }
 0x348   : >> { %1415 = vpow2.f32 %v869_v17  ;;  %v863_v25 = vsub.f32 %v847_v38, %v853_v27  ;;  %v1025_v27 = vmul.f32 2.0, %v1794_v18  ;;  %v1027_v18 = vmul.f32 2.0, %v1798_v20 }
 0x34a   : >> { %v867_v29 = vmul.f32 1.442695, %v863_v25 }
 0x34b   : >> { %v859_v31 = vpop.xlane.xlu1 %858 }
 0x34c   : >> { %1417 = vpow2.f32 %v867_v29  ;;  %v865_v35 = vsub.f32 %v849_v42, %v859_v31 }
 0x34e   : >> { %v871_v39 = vmul.f32 1.442695, %v865_v35 }
 0x34f   : >> { %v862_v33 = vpop.xlane.xlu1 %861 }
 0x350   : >> { %1419 = vpow2.f32 %v871_v39  ;;  %v866_v62 = vsub.f32 %v850_v51, %v862_v33 }
 0x352   : >> { %v1416_v16 = vpop.eup %1415  ;;  %v873_v24 = vmul.f32 1.442695, %v866_v62 }
 0x353   : >> { %v878_v26 = vsel %vm336_vm0, %v1416_v16, 0.0 }
 0x354   : >> { %1421 = vpow2.f32 %v873_v24  ;;  %879 = vadd.xlane.f32.xlu1 %v878_v26 }
 0x356   : >> { %v1418_v30 = vpop.eup %1417 }
 0x357   : >> { %v875_v32 = vsel %vm336_vm0, %v1418_v30, 0.0 }
 0x358   : >> { %876 = vadd.xlane.f32.xlu1 %v875_v32 }
 0x35a   : >> { %v1420_v37 = vpop.eup %1419 }
 0x35b   : >> { %v881_v28 = vsel %vm336_vm0, %v1420_v37, 0.0 }
 0x35c   : >> { %882 = vadd.xlane.f32.xlu1 %v881_v28 }
 0x35e   : >> { %v1422_v34 = vpop.eup %1421 }
 0x35f   : >> { %v884_v36 = vsel %vm336_vm0, %v1422_v34, 0.0 }
 0x360   : >> { %885 = vadd.xlane.f32.xlu0 %v884_v36 }
 0x36d   : >> { %998 = vperm.xlu1 %1380, %v1761_v12  }
 0x371   : >> { %1008 = vperm.xlu1 %1380, %v1771_v14  }
 0x375   : >> { %1013 = vperm.xlu1 %1380, %v1776_v15  }
 0x376   : >> { %1003 = vperm.xlu0 %1379, %v1766_v13  }
 0x3e1   : >> { %v880_v38 = vpop.xlane.xlu1 %879 }
 0x3e2   : >> { %1423 = vrcp.f32 %v880_v38 }
 0x3e5   : >> { %v877_v40 = vpop.xlane.xlu1 %876 }
 0x3e6   : >> { %1425 = vrcp.f32 %v877_v40 }
 0x3e9   : >> { %v883_v41 = vpop.xlane.xlu1 %882 }
 0x3ea   : >> { %1427 = vrcp.f32 %v883_v41 }
 0x3ec   : >> { %v1424_v49 = vpop.eup %1423 }
 0x3ed   : >> { %v886_v42 = vpop.xlane.xlu0 %885  ;;  %v892_v23 = vmul.f32 %v1424_v49, %v1416_v16  ;;  %v999_v46 = vpop.permute.xlu1 %998 }
 0x3ee   : >> { %1429 = vrcp.f32 %v886_v42 }
 0x3f0   : >> { %v1426_v21 = vpop.eup %1425 }
 0x3f1   : >> { %v891_v51 = vmul.f32 %v1426_v21, %v1418_v30  ;;  %v1009_v60 = vpop.permute.xlu1 %1008 }
 0x3f3   : >> { %1298 = vmatprep.mubr.msk.f32.mxu1 %vm336_vm0, %v891_v51 }
 0x3f4   : >> { %v1428_v52 = vpop.eup %1427  ;;  %1299 = vmatmul.mubr.msk.f32.vlgmr.msra.gmra.mrb[8].mxu1 %vm336_vm0, %v892_v23 }
 0x3f5   : >> { %v893_v44 = vmul.f32 %v1428_v52, %v1420_v37  ;;  %v1004_v56 = vpop.permute.xlu0 %1003  ;;  %v1014_v62 = vpop.permute.xlu1 %1013 }
 0x3f7   : >> { %1301 = vmatprep.mubr.msk.f32.mxu1 %vm336_vm0, %v893_v44 }
 0x3f8   : >> { %v1430_v45 = vpop.eup %1429 }
 0x3f9   : >> { %v894_v43 = vmul.f32 %v1430_v45, %v1422_v34 }
 0x3fb   : >> { %1302 = vmatmul.mubr.msk.f32.gmra.mrb[10].mxu1 %vm336_vm0, %v894_v43 }
 0x4c7   : >> { %v1300_v47 = vpop.f32.mrb[8].mxu1 }
 0x4c8   : >> { %v993_v48 = vadd.f32 %v1300_v47, %v747_v61  ;;  %v973_v54 = vpop.f32.mrb[9].mxu1 }
 0x4c9   : >> { %v992_v53 = vadd.f32 %v973_v54, %v1930_v50 }
 0x4ca   : >> { %v1017_v59 = vadd.f32 %v1004_v56, %v993_v48 }
 0x4cb   : >> { %v1016_v17 = vadd.f32 %v999_v46, %v992_v53 }
 0x4cc   : >> { %v1022_v25 = vmul.f32 %v1020_v55, %v1017_v59 }
 0x4cd   : >> { %v1021_v29 = vmul.f32 %v1020_v55, %v1016_v17 }
 0x4ce   : >> { %v1030_v31 = vadd.f32 %v1026_v63, %v1022_v25  ;;  %v1303_v35 = vpop.f32.mrb[10].mxu1 }
 0x4cf   : >> { %v1029_v39 = vadd.f32 %v1025_v27, %v1021_v29  ;;  %v995_v61 = vadd.f32 %v1303_v35, %v1932_v57  ;;  %v983_v33 = vpop.f32.mrb[11].mxu1 }
 0x4d0   : >> { %1035 = vst [vmem:[%s1033_s30 + $0x8] sm:$0xff] %v1030_v31  ;;  %v994_v50 = vadd.f32 %v983_v33, %v1928_v58 }
 0x4d1   : >> { %1034 = vst [vmem:[%s1033_s30] sm:$0xff] %v1029_v39  ;;  %v1019_v16 = vadd.f32 %v1014_v62, %v995_v61 }
 0x4d2   : >> { %v1018_v24 = vadd.f32 %v1009_v60, %v994_v50  ;;  %296 = sbr.rel (!%p294_p6) target bundleno = 64 (0x40), region = 98 }
 0x4d3   : >> { %v1024_v26 = vmul.f32 %v1020_v55, %v1019_v16 }
 0x4d4   : >> { %v1023_v30 = vmul.f32 %v1020_v55, %v1018_v24 }
 0x4d5   : >> { %v1032_v32 = vadd.f32 %v1028_v19, %v1024_v26 }
 0x4d6   : >> { %v1031_v37 = vadd.f32 %v1027_v18, %v1023_v30 }
 0x4d7   : >> { %1037 = vst [vmem:[%s1033_s30 + $0x18] sm:$0xff] %v1032_v32 }
 0x4d8   : >> { %1036 = vst [vmem:[%s1033_s30 + $0x10] sm:$0xff] %v1031_v37 }
 0x4d9   : > { %1474 = shalt.err (!%p1471_p4)
}
 0x4da   : > { %s1475_s9 = scalar_lea.hbm %s1964_s13, 16384  ;;  %s1479_s22 = scalar_lea.hbm %s2017_s6, 32768 }
 0x4db   : > { %p1476_p5 = scmp.ne.s32.totalorder %s1964_s13, %s1475_s9  ;;  %p1480_p1 = scmp.lt.u32.totalorder %s1964_s13, %s2017_s6 }
 0x4dc   : > { %p1481_p3 = scmp.lt.u32.totalorder %s1479_s22, %s1475_s9  ;;  %p1483_p11 = scmp.lt.u32.totalorder %s1475_s9, %s1964_s13 }
 0x4dd   : > { %p1477_p7 = pnand %p1476_p5, %p2024_p12 }
 0x4de   : > { %p1482_p6 = por %p1481_p3, %p1480_p1 }
 0x4df   : > { %p1478_p9 = pneg %p1477_p7 }
 0x4e0   : > { %p1484_p13 = por %p1483_p11, %p1482_p6 }
 0x4e2   : > { %p1485_p8 = pnand %p1484_p13, %p1478_p9 }
 0x4e4   : > { %1488 = shalt.err (!%p1485_p8)
}
 0x4e5   : > { %s1542_s19 = smov 128   ;;  %s1543_s20 = smov 8  }
 0x4e6   : > { %1322 = dma.vmem_to_hbm [thread:$0]  (%p2024_p12), %s1967_s12, 16384, %s1964_s13, %s1039_s14, %s1542_s19, %s1542_s19, %s1543_s20  }
 0x4e7 PF: > { %s1068_s21 = sand.u32 1, %s1519_s23   ;;  %p2025_p10 = scmp.ne.s32.totalorder %s2022_s11, 0 }
 0x4e8   : > { %p2026_p0 = scmp.ge.s32.totalorder %s1531_s26, 2  ;;  %s1069_s15 = scalar_lea.sflag [#allocation5], %s1068_s21 }
 0x4ea   : > { %p1329_p2 = pnand %p2026_p0, %p2025_p10 }
 0x4ec   : > { %1514 = dma.done.wait (!%p1329_p2), %s1069_s15, 16384  }
 0x4ed   : > { %1516 = vsyncadd (!%p1329_p2), %s1069_s15, 4294950912  ;;  %p20_p4 = scmp.ge.s32.totalorder %s1607_s28, 4   ;;  %s2027_s23 = smov %s1523_s24 }
 0x4ee   : > { %s2028_s24 = smov %s1527_s25  ;;  %s2029_s25 = smov %s1619_s7 }
 0x4ef   : > { %s2030_s26 = smov %s1607_s28  ;;  %22 = sbr.rel (!%p20_p4) target bundleno = 7 (0x7), region = 109 }
 0x4f6   :  { %1074 = vsyncpa [#allocation4], 1 }
 0x4f7   :  { %1076 = vsyncpa [#allocation4 + $0x1], 1 }
 0x4f8   :  { %1077 = vsyncpa [#allocation5], 1 }
 0x4f9   :  { %1079 = vsyncpa [#allocation5 + $0x1], 1 }

</bundles_post_ra>
